<compile_context>
chip_gen: v6e
topology: v6e:2x2x1
jax: 0.10.0
libtpu: 0.0.40
codegen_flags: <defaults>
</compile_context>

<pallas_src>
import functools

import jax
import jax.numpy as jnp
from jax.experimental import pallas as pl
from jax.experimental.pallas import tpu as pltpu

LANE = 128


def _round_up(n, m):
    return (n + m - 1) // m * m


def _round_down(n, m):
    return n // m * m


def _vmem_budget_bytes():
    """~75% of physical VMEM (96 MiB on v5e/v6e, 48 MiB on v7x)."""
    cap = 128 << 20
    try:
        info = pltpu.get_tpu_info()
        cap = int(getattr(info, "vmem_capacity_bytes", cap)) or cap
    except Exception:
        pass
    return (cap * 3) // 4


# --------------------------------------------------------------------------
# Kernels
# --------------------------------------------------------------------------
def _se_fused_kernel(x_ref, w1t_ref, b1_ref, w2t_ref, b2_ref, o_ref, *, inv_s):
    # One (bB, C, S) batch slab per grid step: 1 read + 1 write of x.
    x = x_ref[...]                                                    # (bB, C, S)
    pooled = jnp.sum(x.astype(jnp.float32), axis=-1) * inv_s          # (bB, C), f32 accum
    h = jnp.dot(pooled, w1t_ref[...],
                preferred_element_type=jnp.float32) + b1_ref[...]      # (bB, Cr)
    h = jnp.maximum(h, 0.0)
    g = jnp.dot(h, w2t_ref[...],
                preferred_element_type=jnp.float32) + b2_ref[...]      # (bB, C)
    gate = jax.nn.sigmoid(g)
    o_ref[...] = (x.astype(jnp.float32) * gate[..., None]).astype(o_ref.dtype)


def _pool_mlp_kernel(x_ref, w1t_ref, b1_ref, w2t_ref, b2_ref, y_ref, acc_ref,
                     *, inv_s, t_s, total_s, ragged):
    # Grid = (batch blocks ["parallel"], spatial tiles ["arbitrary", last]).
    s_idx = pl.program_id(1)

    @pl.when(s_idx == 0)
    def _init():
        acc_ref[...] = jnp.zeros_like(acc_ref)

    x = x_ref[...].astype(jnp.float32)                                 # (bB, C, t_s)
    if ragged:
        # Last tile may run past S: out-of-bounds lanes hold unspecified data
        # (x is never padded in HBM), so zero them before accumulating.
        rem = total_s - s_idx * t_s
        lane = jax.lax.broadcasted_iota(jnp.int32, x.shape, dimension=2)
        x = jnp.where(lane < rem, x, 0.0)

    # Lane-wide partial sums: plain VPU adds of 128-lane chunks; the single
    # cross-lane (XLU) reduce happens once at finalize.
    part = x[..., 0:LANE]
    for k in range(1, t_s // LANE):
        part = part + x[..., k * LANE:(k + 1) * LANE]
    acc_ref[...] += part                                               # (bB, C, LANE)

    @pl.when(s_idx == pl.num_programs(1) - 1)
    def _finalize():
        pooled = jnp.sum(acc_ref[...], axis=-1) * inv_s                # (bB, C)
        h = jnp.dot(pooled, w1t_ref[...],
                    preferred_element_type=jnp.float32) + b1_ref[...]
        h = jnp.maximum(h, 0.0)
        g = jnp.dot(h, w2t_ref[...],
                    preferred_element_type=jnp.float32) + b2_ref[...]
        y_ref[...] = jax.nn.sigmoid(g)[..., None].astype(y_ref.dtype)  # (bB, C, 1)


def _scale_kernel(y_ref, x_ref, o_ref):
    # Pure streaming read-modify-write; per-(b, c) gate broadcast along lanes.
    # OOB lanes of the last tile compute garbage but their stores are dropped.
    o_ref[...] = (x_ref[...].astype(jnp.float32) * y_ref[...]).astype(o_ref.dtype)


# --------------------------------------------------------------------------
# Wrapper
# --------------------------------------------------------------------------
def se_forward(x, w1, b1, w2, b2, *, force_two_pass=False, donate_x=False,
               max_block_bytes=None):
    """x: (B, C, D, H, W); w1: (Cr, C); b1: (Cr,); w2: (C, Cr); b2: (C,)."""
    B, C, D, H, W = x.shape
    S = D * H * W
    Cr = w1.shape[0]
    dt_bytes = jnp.dtype(x.dtype).itemsize
    inv_s = 1.0 / float(S)

    # PyTorch Linear is (out, in); pre-transpose so in-kernel dots need no .T.
    w1t = jnp.asarray(w1).T              # (C, Cr)
    w2t = jnp.asarray(w2).T              # (Cr, C)
    b1r = jnp.asarray(b1).reshape(1, Cr)
    b2r = jnp.asarray(b2).reshape(1, C)

    x_flat = x.reshape(B, C, S)          # free reshape, no HBM copy

    # Per-generation VMEM budgets (v5e/v6e ~96 MiB usable, v7x ~48 MiB).
    usable = _vmem_budget_bytes()
    w_bytes = 2 * (C * Cr + Cr * C + Cr + C) * jnp.dtype(w1t.dtype).itemsize
    misc = 4 << 20                       # gates / accumulator / compiler slack

    def _cap(budget):
        budget = max(budget, 1 << 20)
        if max_block_bytes is not None:
            budget = min(budget, int(max_block_bytes))
        return budget

    # ---------- Fused per-batch-slab path ----------
    # Per step: 2x(in) + 2x(out) slab buffers + weights.
    fused_budget = _cap((usable - w_bytes - misc) // 4)
    slab_bytes = C * S * dt_bytes
    use_fused = (not force_two_pass) and slab_bytes <= fused_budget

    if use_fused:
        cands = [d for d in range(1, B + 1)
                 if B % d == 0 and d * slab_bytes <= fused_budget]
        bB = max(cands) if cands else 1
        nB = B // bB
        out_flat = pl.pallas_call(
            functools.partial(_se_fused_kernel, inv_s=inv_s),
            out_shape=jax.ShapeDtypeStruct((B, C, S), x.dtype),
            grid_spec=pltpu.PrefetchScalarGridSpec(
                num_scalar_prefetch=0,
                grid=(nB,),
                in_specs=[
                    pl.BlockSpec((bB, C, S), lambda b: (b, 0, 0)),
                    pl.BlockSpec((C, Cr), lambda b: (0, 0)),
                    pl.BlockSpec((1, Cr), lambda b: (0, 0)),
                    pl.BlockSpec((Cr, C), lambda b: (0, 0)),
                    pl.BlockSpec((1, C), lambda b: (0, 0)),
                ],
                out_specs=pl.BlockSpec((bB, C, S), lambda b: (b, 0, 0)),
            ),
            compiler_params=pltpu.CompilerParams(
                dimension_semantics=("parallel",),
                vmem_limit_bytes=int(usable)),
            input_output_aliases=({0: 0} if donate_x else {}),
        )(x_flat, w1t, b1r, w2t, b2r)
        return out_flat.reshape(B, C, D, H, W)

    # ---------- Two-pass tiled path (large volumes) ----------
    # Pass 1 double-buffers only the x block; pass 2 needs 2x in + 2x out.
    p1_budget = _cap((usable - w_bytes - misc) // 2)
    p2_budget = _cap((usable - misc) // 4)

    cands = [d for d in range(1, B + 1)
             if B % d == 0 and d * C * LANE * dt_bytes <= p2_budget]
    bB = max(cands) if cands else 1
    nB = B // bB
    row_bytes = bB * C * dt_bytes

    s_pad = _round_up(S, LANE)
    # Pass-1 tile: cap at 64 lane-chunks so the unrolled VPU-add chain stays small.
    tS1 = min(max(_round_down(p1_budget // row_bytes, LANE), LANE), 64 * LANE, s_pad)
    tS2 = min(max(_round_down(p2_budget // row_bytes, LANE), LANE), s_pad)
    nS1 = pl.cdiv(S, tS1)
    nS2 = pl.cdiv(S, tS2)
    ragged1 = (S % tS1) != 0

    # Pass 1: pooled mean per (b, c) + batched excitation MLP -> gates (B, C, 1).
    gates = pl.pallas_call(
        functools.partial(_pool_mlp_kernel, inv_s=inv_s, t_s=tS1, total_s=S,
                          ragged=ragged1),
        out_shape=jax.ShapeDtypeStruct((B, C, 1), jnp.float32),
        grid_spec=pltpu.PrefetchScalarGridSpec(
            num_scalar_prefetch=0,
            grid=(nB, nS1),
            in_specs=[
                pl.BlockSpec((bB, C, tS1), lambda b, s: (b, 0, s)),
                pl.BlockSpec((C, Cr), lambda b, s: (0, 0)),
                pl.BlockSpec((1, Cr), lambda b, s: (0, 0)),
                pl.BlockSpec((Cr, C), lambda b, s: (0, 0)),
                pl.BlockSpec((1, C), lambda b, s: (0, 0)),
            ],
            out_specs=pl.BlockSpec((bB, C, 1), lambda b, s: (b, 0, 0)),
            scratch_shapes=[pltpu.VMEM((bB, C, LANE), jnp.float32)],
        ),
        compiler_params=pltpu.CompilerParams(
            dimension_semantics=("parallel", "arbitrary"),
            vmem_limit_bytes=int(usable)),
    )(x_flat, w1t, b1r, w2t, b2r)

    # Pass 2: stream x and scale by gates (lane-dense tiles; OOB stores dropped).
    out_flat = pl.pallas_call(
        _scale_kernel,
        out_shape=jax.ShapeDtypeStruct((B, C, S), x.dtype),
        grid_spec=pltpu.PrefetchScalarGridSpec(
            num_scalar_prefetch=0,
            grid=(nB, nS2),
            in_specs=[
                pl.BlockSpec((bB, C, 1), lambda b, s: (b, 0, 0)),
                pl.BlockSpec((bB, C, tS2), lambda b, s: (b, 0, s)),
            ],
            out_specs=pl.BlockSpec((bB, C, tS2), lambda b, s: (b, 0, s)),
        ),
        compiler_params=pltpu.CompilerParams(
            dimension_semantics=("parallel", "parallel"),
            vmem_limit_bytes=int(usable)),
        input_output_aliases=({1: 0} if donate_x else {}),
    )(gates, x_flat)

    return out_flat.reshape(B, C, D, H, W)


def se_reference(x, w1, b1, w2, b2):
    B, C = x.shape[0], x.shape[1]
    y = jnp.mean(x, axis=(2, 3, 4))                    # (B, C)
    y = jnp.maximum(y @ w1.T + b1, 0.0)                # (B, Cr)
    y = jax.nn.sigmoid(y @ w2.T + b2)                  # (B, C)
    return x * y.reshape(B, C, 1, 1, 1)


if __name__ == "__main__":
    B, C = 2, 32
    reduction_ratio = 16
    Cr = C // reduction_ratio

    key = jax.random.PRNGKey(0)
    kx, k1, k2, k3, k4, kx2, kx3 = jax.random.split(key, 7)

    # PyTorch Linear layout: (out, in).
    w1 = jax.random.normal(k1, (Cr, C), dtype=jnp.float32) * 0.1
    b1 = jax.random.normal(k2, (Cr,), dtype=jnp.float32) * 0.1
    w2 = jax.random.normal(k3, (C, Cr), dtype=jnp.float32) * 0.1
    b2 = jax.random.normal(k4, (C,), dtype=jnp.float32) * 0.1

    # 1) Unaligned spatial size (S = 80): fused path, no pad / no slice.
    x1 = jax.random.normal(kx, (B, C, 4, 4, 5), dtype=jnp.float32)
    out1 = jax.block_until_ready(se_forward(x1, w1, b1, w2, b2))
    ref1 = se_reference(x1, w1, b1, w2, b2)
    assert out1.shape == x1.shape
    assert jnp.allclose(out1, ref1, atol=1e-5, rtol=1e-5)

    # 2) Same unaligned input forced through the two-pass path: single ragged
    #    128-lane tile -> exercises the in-kernel lane mask.
    out2 = jax.block_until_ready(
        se_forward(x1, w1, b1, w2, b2, force_two_pass=True))
    assert jnp.allclose(out2, ref1, atol=1e-5, rtol=1e-5)

    # 3) Multi-tile spatial accumulation with a ragged last tile (S = 576),
    #    tiny block budget forces several "arbitrary" reduction steps.
    x3 = jax.random.normal(kx2, (B, C, 8, 8, 9), dtype=jnp.float32)
    out3 = jax.block_until_ready(
        se_forward(x3, w1, b1, w2, b2, force_two_pass=True,
                   max_block_bytes=C * LANE * 4))
    ref3 = se_reference(x3, w1, b1, w2, b2)
    assert jnp.allclose(out3, ref3, atol=1e-5, rtol=1e-5)

    # 4) Lane-aligned volume (S = 512): fused path, batch block = B.
    x4 = jax.random.normal(kx3, (B, C, 8, 8, 8), dtype=jnp.float32)
    out4 = jax.block_until_ready(se_forward(x4, w1, b1, w2, b2))
    ref4 = se_reference(x4, w1, b1, w2, b2)
    assert jnp.allclose(out4, ref4, atol=1e-5, rtol=1e-5)

    # 5) Same volume with a budget that forces the fused path to pipeline over
    #    a per-batch grid (bB = 1, nB = 2).
    out5 = jax.block_until_ready(
        se_forward(x4, w1, b1, w2, b2, max_block_bytes=C * 512 * 4))
    assert jnp.allclose(out5, ref4, atol=1e-5, rtol=1e-5)

    print("KERNEL_OK")
</pallas_src>

<mosaic_0001>
module attributes {stable_mosaic.version = 11 : i64} {
  func.func @_se_fused_kernel(%arg0: i32, %arg1: memref<2x32x80xf32, #tpu.memory_space<vmem>>, %arg2: memref<32x2xf32, #tpu.memory_space<vmem>>, %arg3: memref<1x2xf32, #tpu.memory_space<vmem>>, %arg4: memref<2x32xf32, #tpu.memory_space<vmem>>, %arg5: memref<1x32xf32, #tpu.memory_space<vmem>>, %arg6: memref<2x32x80xf32, #tpu.memory_space<vmem>>) attributes {dimension_semantics = [#tpu.dimension_semantics<parallel>], iteration_bounds = array<i64: 1>, scalar_prefetch = 0 : i64, scratch_operands = 0 : i64, tpu.core_type = #tpu.core_type<tc>, window_params = [{transform_indices = @transform_0, window_bounds = array<i64: 2, 32, 80>}, {pipeline_mode = #tpu.pipeline_mode<synchronous>, transform_indices = @transform_1, window_bounds = array<i64: 32, 2>}, {pipeline_mode = #tpu.pipeline_mode<synchronous>, transform_indices = @transform_2, window_bounds = array<i64: 1, 2>}, {pipeline_mode = #tpu.pipeline_mode<synchronous>, transform_indices = @transform_3, window_bounds = array<i64: 2, 32>}, {pipeline_mode = #tpu.pipeline_mode<synchronous>, transform_indices = @transform_4, window_bounds = array<i64: 1, 32>}, {transform_indices = @transform_5, window_bounds = array<i64: 2, 32, 80>}]} {
    %c0 = arith.constant 0 : index
    %c0_0 = arith.constant 0 : index
    %c0_1 = arith.constant 0 : index
    %0 = vector.load %arg1[%c0, %c0_0, %c0_1] : memref<2x32x80xf32, #tpu.memory_space<vmem>>, vector<2x32x80xf32>
    %cst = arith.constant dense<0.000000e+00> : vector<2x32xf32>
    %1 = vector.multi_reduction <add>, %0, %cst [2] : vector<2x32x80xf32> to vector<2x32xf32>
    %cst_2 = arith.constant 1.250000e-02 : f32
    %2 = vector.broadcast %cst_2 : f32 to vector<2x32xf32>
    %3 = arith.mulf %1, %2 : vector<2x32xf32>
    %c0_3 = arith.constant 0 : index
    %c0_4 = arith.constant 0 : index
    %4 = vector.load %arg2[%c0_3, %c0_4] : memref<32x2xf32, #tpu.memory_space<vmem>>, vector<32x2xf32>
    %cst_5 = arith.constant dense<0.000000e+00> : vector<2x2xf32>
    %5 = tpu.matmul %3, %4, %cst_5 {dimension_numbers = #tpu.dot_dimension_numbers<[1], [0], [0], [1], [0, 0, 1, 1], [], []>} : vector<2x32xf32>, vector<32x2xf32>, vector<2x2xf32> -> vector<2x2xf32>
    %c0_6 = arith.constant 0 : index
    %c0_7 = arith.constant 0 : index
    %6 = vector.load %arg3[%c0_6, %c0_7] : memref<1x2xf32, #tpu.memory_space<vmem>>, vector<1x2xf32>
    %7 = vector.broadcast %6 : vector<1x2xf32> to vector<2x2xf32>
    %8 = arith.addf %5, %7 : vector<2x2xf32>
    %cst_8 = arith.constant 0.000000e+00 : f32
    %9 = vector.broadcast %cst_8 : f32 to vector<2x2xf32>
    %10 = arith.maximumf %8, %9 : vector<2x2xf32>
    %c0_9 = arith.constant 0 : index
    %c0_10 = arith.constant 0 : index
    %11 = vector.load %arg4[%c0_9, %c0_10] : memref<2x32xf32, #tpu.memory_space<vmem>>, vector<2x32xf32>
    %cst_11 = arith.constant dense<0.000000e+00> : vector<2x32xf32>
    %12 = tpu.matmul %10, %11, %cst_11 {dimension_numbers = #tpu.dot_dimension_numbers<[1], [0], [0], [1], [0, 0, 1, 1], [], []>} : vector<2x2xf32>, vector<2x32xf32>, vector<2x32xf32> -> vector<2x32xf32>
    %c0_12 = arith.constant 0 : index
    %c0_13 = arith.constant 0 : index
    %13 = vector.load %arg5[%c0_12, %c0_13] : memref<1x32xf32, #tpu.memory_space<vmem>>, vector<1x32xf32>
    %14 = vector.broadcast %13 : vector<1x32xf32> to vector<2x32xf32>
    %15 = arith.addf %12, %14 : vector<2x32xf32>
    %16 = arith.negf %15 : vector<2x32xf32>
    %17 = math.exp %16 : vector<2x32xf32>
    %cst_14 = arith.constant 1.000000e+00 : f32
    %18 = vector.broadcast %cst_14 : f32 to vector<2x32xf32>
    %19 = arith.addf %18, %17 : vector<2x32xf32>
    %20 = arith.divf %18, %19 : vector<2x32xf32>
    %21 = vector.shape_cast %20 : vector<2x32xf32> to vector<2x32x1xf32>
    %22 = vector.broadcast %21 : vector<2x32x1xf32> to vector<2x32x80xf32>
    %23 = arith.mulf %0, %22 : vector<2x32x80xf32>
    %c0_15 = arith.constant 0 : index
    %c0_16 = arith.constant 0 : index
    %c0_17 = arith.constant 0 : index
    %24 = vector.load %arg6[%c0_15, %c0_16, %c0_17] : memref<2x32x80xf32, #tpu.memory_space<vmem>>, vector<2x32x80xf32>
    tpu.vector_store %arg6[%c0_15, %c0_16, %c0_17], %23 {strides = array<i32>} : memref<2x32x80xf32, #tpu.memory_space<vmem>>, vector<2x32x80xf32>,
    return
  }
  func.func @transform_0(%arg0: i32) -> (i32, i32, i32) {
    %c0_i32 = arith.constant 0 : i32
    %c0_i32_0 = arith.constant 0 : i32
    %c0_i32_1 = arith.constant 0 : i32
    return %arg0, %c0_i32, %c0_i32_0 : i32, i32, i32
  }
  func.func @transform_1(%arg0: i32) -> (i32, i32) {
    %c0_i32 = arith.constant 0 : i32
    %c0_i32_0 = arith.constant 0 : i32
    %c0_i32_1 = arith.constant 0 : i32
    return %c0_i32, %c0_i32_0 : i32, i32
  }
  func.func @transform_2(%arg0: i32) -> (i32, i32) {
    %c0_i32 = arith.constant 0 : i32
    %c0_i32_0 = arith.constant 0 : i32
    %c0_i32_1 = arith.constant 0 : i32
    return %c0_i32, %c0_i32_0 : i32, i32
  }
  func.func @transform_3(%arg0: i32) -> (i32, i32) {
    %c0_i32 = arith.constant 0 : i32
    %c0_i32_0 = arith.constant 0 : i32
    %c0_i32_1 = arith.constant 0 : i32
    return %c0_i32, %c0_i32_0 : i32, i32
  }
  func.func @transform_4(%arg0: i32) -> (i32, i32) {
    %c0_i32 = arith.constant 0 : i32
    %c0_i32_0 = arith.constant 0 : i32
    %c0_i32_1 = arith.constant 0 : i32
    return %c0_i32, %c0_i32_0 : i32, i32
  }
  func.func @transform_5(%arg0: i32) -> (i32, i32, i32) {
    %c0_i32 = arith.constant 0 : i32
    %c0_i32_0 = arith.constant 0 : i32
    %c0_i32_1 = arith.constant 0 : i32
    return %arg0, %c0_i32, %c0_i32_0 : i32, i32, i32
  }
}

</mosaic_0001>

<bundles_post_ra>
// kernel: tpu_custom_call.1
= control target key start
LH: loop header
LB: loop body
LE: loop exit
PB: predicated region body
PF: predicated region fallthrough
CT: control target
= control target key end

     0   :  { %10 = vsyncpa [#allocation3], 0  ;;  %s590_s0 = inlined_call_operand.hbm [shape: f32[2,32,80], index: 0, kind: input, shape index: {}]   ;;  %s591_s1 = inlined_call_operand.vmem [shape: f32[32,2], index: 1, kind: input, shape index: {}]   ;;  %s592_s2 = inlined_call_operand.vmem [shape: f32[1,2], index: 2, kind: input, shape index: {}]   ;;  %s593_s3 = inlined_call_operand.vmem [shape: f32[2,32], index: 3, kind: input, shape index: {}]   ;;  %s594_s4 = inlined_call_operand.vmem [shape: f32[1,32], index: 4, kind: input, shape index: {}]   ;;  %s595_s5 = inlined_call_operand.hbm [shape: f32[2,32,80], index: 5, kind: output, shape index: {}]  }
   0x1   :  { %11 = vsyncpa [#allocation4], 0  ;;  %s463_s18 = smov [#allocation2]  }
   0x2   :  { %s17_s19 = sshll.u32 %s463_s18, 4  ;;  %s18_s19 = int_to_ptr.vmem [resolvable:$true] %s17_s19 }
   0x3   :  { %s427_s20 = scalar_lea.vmem %s18_s19, 1024  ;;  %p432_p1 = scmp.lt.s32.totalorder %s18_s19, %s18_s19 }
   0x4   :  { %p428_p0 = scmp.ne.s32.totalorder %s18_s19, %s427_s20  ;;  %p433_p2 = scmp.lt.s32.totalorder %s427_s20, %s427_s20 }
   0x6   :  { %p434_p3 = por %p433_p2, %p432_p1 }
   0x8   :  { %p435_p4 = pnand %p434_p3, %p428_p0 }
   0xa   :  { %438 = shalt.err (!%p435_p4)
}
   0xb   :  { %s464_s21 = smov 128   ;;  %s465_s22 = smov 8  }
   0xc   :  { %23 = dma.hbm_to_vmem [thread:$0]  %s590_s0, 1024, %s18_s19, [#allocation3], %s464_s21, %s464_s21, %s465_s22  }
   0xd   :  { %459 = dma.done.wait [#allocation3], 1024  }
   0xe   :  { %460 = vsyncadd [#allocation3], 4294966272  ;;  %vm43_vm0 = vcmask 654336   ;;  %v505_v0 = vld [vmem:[#allocation2 + $0x20] sm:$0xff]  ;;  %v509_v2 = vld [vmem:[#allocation2 + $0x28] sm:$0xff]  ;;  %v466_v16 = vmov 0.0   ;;  %v95_v21 = vlaneseq }
   0xf   :  { %v507_v1 = vld [vmem:[#allocation2] sm:$0xff]  ;;  %v56_v3 = vsel %vm43_vm0, %v505_v0, 0.0  ;;  %v515_v5 = vld [vmem:[#allocation2 + $0x8] sm:$0xff]  ;;  %v59_v6 = vsel %vm43_vm0, %v509_v2, 0.0  ;;  %v521_v8 = vld [vmem:[#allocation2 + $0x30] sm:$0xff]  ;;  %393 = vmatprep.subr.mxu0 %v466_v16  ;;  %404 = vmatprep.subr.mxu1 %v466_v16  ;;  %vm467_vm1 = vmmov 0  }
  0x10   :  { %v44_v4 = vsel %vm43_vm0, %v507_v1, 0.0  ;;  %57 = vadd.xlane.f32.xlu1 %v56_v3  ;;  %v47_v7 = vsel %vm43_vm0, %v515_v5, 0.0  ;;  %v523_v9 = vld [vmem:[#allocation2 + $0x10] sm:$0xff]  ;;  %v62_v10 = vsel %vm43_vm0, %v521_v8, 0.0  ;;  %v529_v12 = vld [vmem:[#allocation2 + $0x38] sm:$0xff]  ;;  %v77_v19 = vld [vmem:[%s591_s1 + $0x8] sm:$0xff]  ;;  %401 = vmatprep.mubr.msk.f32.mxu0 %vm467_vm1, %v466_v16 }
  0x11   :  { %45 = vadd.xlane.f32.xlu0 %v44_v4  ;;  %v50_v11 = vsel %vm43_vm0, %v523_v9, 0.0  ;;  %v531_v13 = vld [vmem:[#allocation2 + $0x18] sm:$0xff]  ;;  %v65_v14 = vsel %vm43_vm0, %v529_v12, 0.0  ;;  %v78_v18 = vld [vmem:[%s591_s1 + $0x10] sm:$0xff]  ;;  %v76_v20 = vld [vmem:[%s591_s1] sm:$0xff]  ;;  %406 = vmatprep.mubr.msk.f32.mxu1 %vm467_vm1, %v466_v16  ;;  %v96_v24 = vand.u32 127, %v95_v21 }
  0x12   :  { %v53_v15 = vsel %vm43_vm0, %v531_v13, 0.0  ;;  %v79_v17 = vld [vmem:[%s591_s1 + $0x18] sm:$0xff]  ;;  %v549_v29 = vshrl.u32 %v95_v21, 7  ;;  %vm106_vm2 = vcmask 130112   ;;  %vm113_vm3 = vcmask 195712  }
  0x13   :  { %394 = vmatpush3.msra.mxu0 %v79_v17  ;;  %v101_v25 = vadd.s32 4294967288, %v96_v24  ;;  %v108_v28 = vadd.s32 4294967280, %v96_v24  ;;  %v115_v33 = vadd.s32 4294967272, %v96_v24  ;;  %vm120_vm4 = vcmask 261312   ;;  %v217_v62 = vld [vmem:[%s593_s3] sm:$0x3] }
  0x14   :  { %60 = vadd.xlane.f32.xlu1 %v59_v6  ;;  %395 = vmatprep.subr.mxu0 %v466_v16  ;;  %v99_v38 = vsub.s32 %v96_v24, %v549_v29  ;;  %vm141_vm5 = vcmask 1041409   ;;  %vm143_vm6 = vcmask 261120   ;;  %vm229_vm7 = vcmask 1041408   ;;  %v380_v63 = vld [vmem:[%s592_s2] ss:$0 sm:$0xff]  ;;  %s468_s2 = smov [#allocation5]  }
  0x15   :  { %48 = vadd.xlane.f32.xlu0 %v47_v7  ;;  %396 = vmatpush3.msra.mxu0 %v78_v18  ;;  %v104_v30 = vsub.s32 %v101_v25, %v549_v29  ;;  %v111_v35 = vsub.s32 %v108_v28, %v549_v29  ;;  %v118_v44 = vsub.s32 %v115_v33, %v549_v29  ;;  %vm225_vm8 = vcmask 15360   ;;  %s368_s3 = sshll.u32 %s468_s2, 4  ;;  %s369_s3 = int_to_ptr.vmem [resolvable:$true] %s368_s3 }
  0x16   :  { %397 = vmatprep.subr.mxu0 %v466_v16  ;;  %405 = vmatpush3.msk.msra.mxu1 %vm229_vm7, %v217_v62  ;;  %p444_p6 = scmp.lt.s32.totalorder %s369_s3, %s369_s3 }
  0x17   :  { %398 = vmatpush3.msra.mxu0 %v77_v19  ;;  %v311_v19 = vsub.s32 0, %v549_v29 }
  0x18   :  { %63 = vadd.xlane.f32.xlu1 %v62_v10  ;;  %399 = vmatprep.subr.mxu0 %v466_v16  ;;  %v382_v10 = vld [vmem:[%s594_s4] ss:$0 sm:$0xff]  ;;  %s439_s4 = scalar_lea.vmem %s369_s3, 1024 }
  0x19   :  { %51 = vadd.xlane.f32.xlu0 %v50_v11  ;;  %400 = vmatpush3.msra.mxu0 %v76_v20  ;;  %p440_p5 = scmp.ne.s32.totalorder %s369_s3, %s439_s4  ;;  %p445_p7 = scmp.lt.s32.totalorder %s439_s4, %s439_s4 }
  0x1b   :  { %p446_p8 = por %p445_p7, %p444_p6 }
  0x1c   :  { %66 = vadd.xlane.f32.xlu1 %v65_v14 }
  0x1d   :  { %54 = vadd.xlane.f32.xlu0 %v53_v15  ;;  %p447_p9 = pnand %p446_p8, %p440_p5 }
  0x99   :  { %v58_v22 = vpop.xlane.xlu1 %57 }
  0x9a   :  { %v46_v23 = vpop.xlane.xlu0 %45  ;;  %v72_v34 = vmul.f32 0.0125, %v58_v22  ;;  %v330_v22 = vsub.s32 1, %v549_v29 }
  0x9b   :  { %v68_v39 = vmul.f32 0.0125, %v46_v23 }
  0x9c   :  { %v125_v49 = vrot.slane %v72_v34, %v99_v38 }
  0x9d   :  { %v61_v26 = vpop.xlane.xlu1 %60  ;;  %v100_v50 = vrot.slane %v68_v39, %v99_v38 }
  0x9e   :  { %v49_v27 = vpop.xlane.xlu0 %48  ;;  %v73_v31 = vmul.f32 0.0125, %v61_v26 }
  0x9f   :  { %v69_v32 = vmul.f32 0.0125, %v49_v27 }
  0xa0   :  { %v129_v42 = vrot.slane %v73_v31, %v104_v30 }
  0xa1   :  { %v64_v36 = vpop.xlane.xlu1 %63  ;;  %v105_v43 = vrot.slane %v69_v32, %v104_v30 }
  0xa2   :  { %v52_v37 = vpop.xlane.xlu0 %51  ;;  %v74_v40 = vmul.f32 0.0125, %v64_v36  ;;  %v130_v53 = vsel %vm106_vm2, %v129_v42, %v125_v49 }
  0xa3   :  { %v70_v41 = vmul.f32 0.0125, %v52_v37  ;;  %v107_v54 = vsel %vm106_vm2, %v105_v43, %v100_v50 }
  0xa4   :  { %v134_v45 = vrot.slane %v74_v40, %v111_v35 }
  0xa5   :  { %v112_v46 = vrot.slane %v70_v41, %v111_v35  ;;  %v67_v47 = vpop.xlane.xlu1 %66 }
  0xa6   :  { %v55_v48 = vpop.xlane.xlu0 %54  ;;  %v75_v51 = vmul.f32 0.0125, %v67_v47  ;;  %v135_v57 = vsel %vm113_vm3, %v134_v45, %v130_v53 }
  0xa7   :  { %v71_v52 = vmul.f32 0.0125, %v55_v48  ;;  %v114_v58 = vsel %vm113_vm3, %v112_v46, %v107_v54 }
  0xa8   :  { %v139_v55 = vrot.slane %v75_v51, %v118_v44 }
  0xa9   :  { %v119_v56 = vrot.slane %v71_v52, %v118_v44 }
  0xaa   :  { %v140_v60 = vsel %vm120_vm4, %v139_v55, %v135_v57 }
  0xab   :  { %v121_v59 = vsel %vm120_vm4, %v119_v56, %v114_v58 }
  0xac   :  { %v142_v61 = vsel %vm141_vm5, %v140_v60, %v121_v59 }
  0xad   :  { %402 = vmatmul.mubr.msk.f32.vlgmr.msra.gmra.mxu0 %vm143_vm6, %v142_v61 }
 0x16d   :  { %v212_v3 = vpop.f32.mrf.mxu0 }
 0x16e   :  { %v213_v4 = vadd.f32 %v380_v63, %v212_v3 }
 0x16f   :  { %v403_v6 = vpop.f32.mrf.mxu0 }
 0x170   :  { %v216_v7 = vmax.f32 %v213_v4, 0.0 }
 0x172   :  { %407 = vmatmul.mubr.msk.f32.vlgmr.msra.gmra.mxu1 %vm225_vm8, %v216_v7 }
 0x232   :  { %v299_v11 = vpop.f32.mrf.mxu1 }
 0x233   :  { %v300_v14 = vadd.f32 %v382_v10, %v299_v11 }
 0x234   :  { %v408_v15 = vpop.f32.mrf.mxu1 }
 0x235   :  { %v385_v16 = vmul.f32 -1.442695, %v300_v14 }
 0x237   :  { %415 = vpow2.f32 %v385_v16 }
 0x244   :  { %v416_v17 = vpop.eup %415 }
 0x245   :  { %v306_v18 = vadd.f32 1.0, %v416_v17 }
 0x247   :  { %417 = vrcp.f32 %v306_v18 }
 0x254   :  { %v418_v20 = vpop.eup %417 }
 0x255   :  { %v312_v21 = vrot.slane %v418_v20, %v311_v19  ;;  %v331_v23 = vrot.slane %v418_v20, %v330_v22 }
 0x257   :  { %318 = vbcast.lane.b32.xlu1 %v312_v21, 264  ;;  %314 = vbcast.lane.b32.xlu0 %v312_v21, 256 }
 0x25b   :  { %322 = vbcast.lane.b32.xlu1 %v312_v21, 272  ;;  %333 = vbcast.lane.b32.xlu0 %v331_v23, 256 }
 0x25f   :  { %326 = vbcast.lane.b32.xlu1 %v312_v21, 280  ;;  %341 = vbcast.lane.b32.xlu0 %v331_v23, 272 }
 0x263   :  { %337 = vbcast.lane.b32.xlu1 %v331_v23, 264 }
 0x267   :  { %345 = vbcast.lane.b32.xlu1 %v331_v23, 280 }
 0x2c9   :  { %v319_v24 = vpop.permute.xlu1 %318  ;;  %v315_v25 = vpop.permute.xlu0 %314 }
 0x2ca   :  { %v348_v26 = vmul.f32 %v319_v24, %v515_v5  ;;  %v347_v27 = vmul.f32 %v315_v25, %v507_v1 }
 0x2cc   :  { %356 = vst.msk [vmem:[#allocation5 + $0x8] sm:$0xff] %vm43_vm0, %v348_v26  ;;  %355 = vst.msk [vmem:[#allocation5] sm:$0xff] %vm43_vm0, %v347_v27 }
 0x2cd   :  { %v323_v28 = vpop.permute.xlu1 %322  ;;  %v334_v29 = vpop.permute.xlu0 %333 }
 0x2ce   :  { %v349_v30 = vmul.f32 %v323_v28, %v523_v9  ;;  %v351_v31 = vmul.f32 %v334_v29, %v505_v0 }
 0x2d0   :  { %357 = vst.msk [vmem:[#allocation5 + $0x10] sm:$0xff] %vm43_vm0, %v349_v30  ;;  %359 = vst.msk [vmem:[#allocation5 + $0x20] sm:$0xff] %vm43_vm0, %v351_v31 }
 0x2d1   :  { %v327_v32 = vpop.permute.xlu1 %326  ;;  %v342_v33 = vpop.permute.xlu0 %341 }
 0x2d2   :  { %v350_v5 = vmul.f32 %v327_v32, %v531_v13  ;;  %v353_v1 = vmul.f32 %v342_v33, %v521_v8 }
 0x2d4   :  { %358 = vst.msk [vmem:[#allocation5 + $0x18] sm:$0xff] %vm43_vm0, %v350_v5  ;;  %361 = vst.msk [vmem:[#allocation5 + $0x30] sm:$0xff] %vm43_vm0, %v353_v1 }
 0x2d5   :  { %v338_v34 = vpop.permute.xlu1 %337 }
 0x2d6   :  { %v352_v35 = vmul.f32 %v338_v34, %v509_v2 }
 0x2d8   :  { %360 = vst.msk [vmem:[#allocation5 + $0x28] sm:$0xff] %vm43_vm0, %v352_v35 }
 0x2d9   :  { %v346_v0 = vpop.permute.xlu1 %345 }
 0x2da   :  { %v354_v9 = vmul.f32 %v346_v0, %v529_v12 }
 0x2dc   :  { %362 = vst.msk [vmem:[#allocation5 + $0x38] sm:$0xff] %vm43_vm0, %v354_v9 }
 0x2dd   :  { %450 = shalt.err (!%p447_p9)
}
 0x2de   :  { %374 = dma.vmem_to_hbm [thread:$0]  %s369_s3, 1024, %s595_s5, [#allocation4], %s464_s21, %s464_s21, %s465_s22  }
 0x2df   :  { %461 = dma.done.wait [#allocation4], 1024  }
 0x2e0   :  { %462 = vsyncadd [#allocation4], 4294966272 }
 0x2e1   :  { %378 = vsyncpa [#allocation3], 1 }
 0x2e2   :  { %379 = vsyncpa [#allocation4], 1 }

</bundles_post_ra>
